<compile_context>
chip_gen: v6e
topology: v6e:2x2x1
jax: 0.10.0
libtpu: 0.0.40
codegen_flags: <defaults>
</compile_context>

<pallas_src>
import jax
import jax.numpy as jnp
import numpy as np
from jax.experimental import pallas as pl
from jax.experimental.pallas import tpu as pltpu

LANES = 128  # lane-padded output width


def _round_up(v, m):
    return (v + m - 1) // m * m


def _pick_vmem_limit():
    # Generation-aware VMEM budget: ~3/4 of physical VMEM, capped, v7x-safe fallback.
    try:
        cap = pltpu.get_tpu_info().vmem_capacity_bytes
        return int(min(cap * 3 // 4, 112 * 1024 * 1024))
    except Exception:
        return 48 * 1024 * 1024


_VMEM_LIMIT = _pick_vmem_limit()


def graphnet_kernel(rows_ref, xe_ref, x_ref,
                    we1_ref, be1_ref, we2_ref, be2_ref,
                    wn1x_ref, wn1a_ref, bn1_ref, wn2_ref, bn2_ref,
                    edge_out_ref, node_out_ref, agg_ref, xpart_ref):
    e_step = pl.program_id(0)
    last = pl.num_programs(0) - 1

    @pl.when(e_step == 0)
    def _prologue():
        agg_ref[...] = jnp.zeros_like(agg_ref)
        # agg-independent half of the node MLP, hoisted under the edge pipeline
        xpart_ref[...] = (jnp.dot(x_ref[...], wn1x_ref[...],
                                  preferred_element_type=jnp.float32) + bn1_ref[...])

    # ---- edge block MLP: Linear -> ReLU -> Linear (bf16 MXU, f32 accumulation) ----
    h = jnp.dot(xe_ref[...], we1_ref[...],
                preferred_element_type=jnp.float32) + be1_ref[...]
    h = jnp.maximum(h, 0.0).astype(jnp.bfloat16)
    # Column LANES-1 of (we2, be2) is (0-weights, bias=1): edge_emb[:, -1] == 1, so the
    # segment-sum matmul below also accumulates per-node edge counts for free.
    edge_emb = jnp.dot(h, we2_ref[...],
                       preferred_element_type=jnp.float32) + be2_ref[...]
    edge_emb_bf = edge_emb.astype(jnp.bfloat16)
    edge_out_ref[...] = edge_emb_bf                    # bf16 lane-dense [tile_e, 128]

    # ---- segment-sum over edges grouped by source node (row), one-hot built in-kernel ----
    n_pad, tile_e = agg_ref.shape[0], xe_ref.shape[0]
    node_ids = jax.lax.broadcasted_iota(jnp.int32, (n_pad, tile_e), 0)
    onehot = (node_ids == rows_ref[...]).astype(jnp.bfloat16)   # no f32 intermediate
    agg_ref[...] += jnp.dot(onehot, edge_emb_bf, preferred_element_type=jnp.float32)

    # ---- node block MLP epilogue on the last E tile ----
    @pl.when(e_step == last)
    def _epilogue():
        agg = agg_ref[...]
        cnt = agg[:, LANES - 1:LANES]                  # per-node edge counts
        inv = pl.reciprocal(jnp.maximum(cnt, 1.0), approx=True)
        agg_mean = (agg * inv).astype(jnp.bfloat16)    # mean aggregation
        nh = xpart_ref[...] + jnp.dot(agg_mean, wn1a_ref[...],
                                      preferred_element_type=jnp.float32)
        nh = jnp.maximum(nh, 0.0).astype(jnp.bfloat16)
        node_out_ref[...] = (jnp.dot(nh, wn2_ref[...],
                                     preferred_element_type=jnp.float32)
                             + bn2_ref[...]).astype(node_out_ref.dtype)


def _graphnet_forward(x, edge_index, edge_attr, params):
    """GraphNet.forward with global_block=None, aggregate='mean', activation='relu'."""
    N, nf = x.shape
    E, _ = edge_attr.shape
    row, col = edge_index[0], edge_index[1]

    we1, be1, we2, be2, wn1, bn1, wn2, bn2 = params
    fin, hidden = we1.shape
    ef_out = we2.shape[1]
    assert ef_out < LANES and nf <= LANES   # last lane is reserved for the edge counts

    # Small graphs: one grid step.  Large graphs: 1024-wide edge tiles.
    if E <= 2048:
        e_pad = _round_up(E, 16)
        tile_e = e_pad
    else:
        tile_e = 1024
        e_pad = _round_up(E, tile_e)
    n_pad = _round_up(N, 16)

    bf = lambda a: a.astype(jnp.bfloat16)

    # glue: cast BEFORE the gather/concat so the two E-row gathers move bf16, not f32
    xb = bf(x)
    xe = jnp.concatenate([xb[row], xb[col], bf(edge_attr)], axis=1)
    xe_p = jnp.pad(xe, ((0, e_pad - E), (0, 0)))
    x_p = jnp.pad(xb, ((0, n_pad - N), (0, 0)))

    # row ids per tile; padded edges get sentinel n_pad -> contribute nothing
    rows_p = jnp.full((1, e_pad), n_pad, jnp.int32).at[0, :E].set(row.astype(jnp.int32))

    # lane-pad output projections with zero columns; reserve lane 127 for the count trick
    we2_p = bf(jnp.pad(we2, ((0, 0), (0, LANES - ef_out))))
    be2_p = jnp.pad(be2, ((0, 0), (0, LANES - ef_out))).at[:, LANES - 1].set(1.0)
    wn1x = bf(wn1[:nf])                                          # x part of concat
    wn1a = bf(jnp.pad(wn1[nf:], ((0, LANES - ef_out), (0, 0))))  # agg part (zero rows)
    wn2_p = bf(jnp.pad(wn2, ((0, 0), (0, LANES - nf))))
    bn2_p = jnp.pad(bn2, ((0, 0), (0, LANES - nf)))

    args = (rows_p, xe_p, x_p,
            bf(we1), be1, we2_p, be2_p,
            wn1x, wn1a, bn1, wn2_p, bn2_p)

    whole = lambda shp: pl.BlockSpec(shp, lambda e: (0, 0))
    in_specs = [
        pl.BlockSpec((1, tile_e), lambda e: (0, e)),       # row ids per E tile
        pl.BlockSpec((tile_e, fin), lambda e: (e, 0)),     # edge-block input per tile
        whole((n_pad, nf)),                                # x (resident)
        whole((fin, hidden)), whole((1, hidden)),          # we1, be1
        whole((hidden, LANES)), whole((1, LANES)),         # we2, be2 (lane-padded + count col)
        whole((nf, hidden)), whole((LANES, hidden)),       # wn1 split (x / agg)
        whole((1, hidden)),                                # bn1
        whole((hidden, LANES)), whole((1, LANES)),         # wn2, bn2 (lane-padded)
    ]
    out_specs = [
        pl.BlockSpec((tile_e, LANES), lambda e: (e, 0)),   # edge embeddings (bf16)
        pl.BlockSpec((n_pad, LANES), lambda e: (0, 0)),    # node embeddings (epilogue, bf16)
    ]

    flops = (2 * e_pad * hidden * (fin + LANES)            # edge MLP
             + 2 * n_pad * e_pad * LANES                   # one-hot segment sum
             + 2 * n_pad * hidden * (nf + 2 * LANES))      # node MLP
    bytes_accessed = (xe_p.size * 2 + x_p.size * 2 + rows_p.size * 4
                      + (we1.size + we2_p.size + wn1x.size + wn1a.size + wn2_p.size) * 2
                      + (be1.size + be2_p.size + bn1.size + bn2_p.size) * 4
                      + (e_pad + n_pad) * LANES * 2)       # bf16 outputs

    edge_out, node_out = pl.pallas_call(
        graphnet_kernel,
        out_shape=(jax.ShapeDtypeStruct((e_pad, LANES), jnp.bfloat16),
                   jax.ShapeDtypeStruct((n_pad, LANES), jnp.bfloat16)),
        grid_spec=pltpu.PrefetchScalarGridSpec(
            num_scalar_prefetch=0,
            grid=(e_pad // tile_e,),
            in_specs=in_specs,
            out_specs=out_specs,
            scratch_shapes=[pltpu.VMEM((n_pad, LANES), jnp.float32),    # agg (+counts)
                            pltpu.VMEM((n_pad, hidden), jnp.float32)]), # x @ wn1x + bn1
        compiler_params=pltpu.CompilerParams(
            dimension_semantics=("arbitrary",),            # E axis is the agg reduction
            vmem_limit_bytes=_VMEM_LIMIT),
        cost_estimate=pl.CostEstimate(flops=int(flops), transcendentals=0,
                                      bytes_accessed=int(bytes_accessed)),
    )(*args)

    return edge_out[:E, :ef_out], node_out[:N, :nf], None


graphnet_forward = jax.jit(_graphnet_forward)


def init_linear(key, fan_in, fan_out):
    # torch.nn.Linear-style uniform init, stored as [in, out] for x @ W
    kw, kb = jax.random.split(key)
    bound = 1.0 / np.sqrt(fan_in)
    w = jax.random.uniform(kw, (fan_in, fan_out), jnp.float32, -bound, bound)
    b = jax.random.uniform(kb, (1, fan_out), jnp.float32, -bound, bound)
    return w, b


def reference_forward(x, edge_index, edge_attr, params):
    # pure-JAX reference with the same precision policy (bf16 operands, f32 accumulate)
    we1, be1, we2, be2, wn1, bn1, wn2, bn2 = params
    row, col = edge_index[0], edge_index[1]
    N, nf = x.shape
    bf = lambda a: a.astype(jnp.bfloat16)
    xe = jnp.concatenate([x[row], x[col], edge_attr], axis=1)
    h = jnp.maximum(jnp.dot(bf(xe), bf(we1), preferred_element_type=jnp.float32) + be1, 0.0)
    edge_emb = jnp.dot(bf(h), bf(we2), preferred_element_type=jnp.float32) + be2
    seg = jax.ops.segment_sum(bf(edge_emb).astype(jnp.float32), row, num_segments=N)
    cnt = jnp.maximum(jax.ops.segment_sum(jnp.ones((edge_emb.shape[0],), jnp.float32),
                                          row, num_segments=N), 1.0)[:, None]
    agg = seg / cnt
    nh = jnp.maximum(jnp.dot(bf(x), bf(wn1[:nf]), preferred_element_type=jnp.float32)
                     + jnp.dot(bf(agg), bf(wn1[nf:]), preferred_element_type=jnp.float32)
                     + bn1, 0.0)
    node_emb = jnp.dot(bf(nh), bf(wn2), preferred_element_type=jnp.float32) + bn2
    return edge_emb, node_emb


def _make_case(key, N, E, node_features, edge_features):
    k_x, k_ea, k_row, k_col = jax.random.split(key, 4)
    x = jax.random.normal(k_x, (N, node_features), jnp.float32)
    edge_attr = jax.random.normal(k_ea, (E, edge_features), jnp.float32)
    row = jax.random.randint(k_row, (E,), 0, N)
    col = jax.random.randint(k_col, (E,), 0, N)
    return x, jnp.stack([row, col], axis=0), edge_attr


if __name__ == "__main__":
    # GraphNet(node_features=8, edge_features=4, hidden_size=32), global_features=0
    node_features = 8
    edge_features = 4
    hidden = 32
    edge_features_out = edge_features    # default: edge_features_out = edge_features

    key = jax.random.PRNGKey(0)
    k_data1, k_data2, k_e1, k_e2, k_n1, k_n2 = jax.random.split(key, 6)

    we1, be1 = init_linear(k_e1, 2 * node_features + edge_features, hidden)
    we2, be2 = init_linear(k_e2, hidden, edge_features_out)
    wn1, bn1 = init_linear(k_n1, edge_features_out + node_features, hidden)
    wn2, bn2 = init_linear(k_n2, hidden, node_features)
    params = (we1, be1, we2, be2, wn1, bn1, wn2, bn2)

    # case 1: small graph -> single-tile path; case 2: larger graph -> multi-tile path
    cases = [_make_case(k_data1, 32, 300, node_features, edge_features),
             _make_case(k_data2, 48, 3000, node_features, edge_features)]

    for x, edge_index, edge_attr in cases:
        N, E = x.shape[0], edge_attr.shape[0]
        edge_emb, node_emb, g_out = graphnet_forward(x, edge_index, edge_attr, params)
        jax.block_until_ready((edge_emb, node_emb))

        ref_edge, ref_node = reference_forward(x, edge_index, edge_attr, params)
        # tolerances account for the bf16 output storage (~3.9e-3 relative rounding)
        np.testing.assert_allclose(np.asarray(edge_emb, dtype=np.float32),
                                   np.asarray(ref_edge), rtol=1e-2, atol=1e-2)
        np.testing.assert_allclose(np.asarray(node_emb, dtype=np.float32),
                                   np.asarray(ref_node), rtol=1e-2, atol=1e-2)
        assert g_out is None
        assert edge_emb.shape == (E, edge_features_out)
        assert node_emb.shape == (N, node_features)

    print("KERNEL_OK")
</pallas_src>

<mosaic_0001>
module attributes {stable_mosaic.version = 11 : i64} {
  func.func @graphnet_kernel(%arg0: i32, %arg1: memref<1x304xi32, #tpu.memory_space<vmem>>, %arg2: memref<304x20xbf16, #tpu.memory_space<vmem>>, %arg3: memref<32x8xbf16, #tpu.memory_space<vmem>>, %arg4: memref<20x32xbf16, #tpu.memory_space<vmem>>, %arg5: memref<1x32xf32, #tpu.memory_space<vmem>>, %arg6: memref<32x128xbf16, #tpu.memory_space<vmem>>, %arg7: memref<1x128xf32, #tpu.memory_space<vmem>>, %arg8: memref<8x32xbf16, #tpu.memory_space<vmem>>, %arg9: memref<128x32xbf16, #tpu.memory_space<vmem>>, %arg10: memref<1x32xf32, #tpu.memory_space<vmem>>, %arg11: memref<32x128xbf16, #tpu.memory_space<vmem>>, %arg12: memref<1x128xf32, #tpu.memory_space<vmem>>, %arg13: memref<304x128xbf16, #tpu.memory_space<vmem>>, %arg14: memref<32x128xbf16, #tpu.memory_space<vmem>>, %arg15: memref<32x128xf32, #tpu.memory_space<vmem>>, %arg16: memref<32x32xf32, #tpu.memory_space<vmem>>) attributes {dimension_semantics = [#tpu.dimension_semantics<arbitrary>], iteration_bounds = array<i64: 1>, scalar_prefetch = 0 : i64, scratch_operands = 2 : i64, tpu.core_type = #tpu.core_type<tc>, window_params = [{transform_indices = @transform_0, window_bounds = array<i64: 1, 304>}, {transform_indices = @transform_1, window_bounds = array<i64: 304, 20>}, {pipeline_mode = #tpu.pipeline_mode<synchronous>, transform_indices = @transform_2, window_bounds = array<i64: 32, 8>}, {pipeline_mode = #tpu.pipeline_mode<synchronous>, transform_indices = @transform_3, window_bounds = array<i64: 20, 32>}, {pipeline_mode = #tpu.pipeline_mode<synchronous>, transform_indices = @transform_4, window_bounds = array<i64: 1, 32>}, {pipeline_mode = #tpu.pipeline_mode<synchronous>, transform_indices = @transform_5, window_bounds = array<i64: 32, 128>}, {pipeline_mode = #tpu.pipeline_mode<synchronous>, transform_indices = @transform_6, window_bounds = array<i64: 1, 128>}, {pipeline_mode = #tpu.pipeline_mode<synchronous>, transform_indices = @transform_7, window_bounds = array<i64: 8, 32>}, {pipeline_mode = #tpu.pipeline_mode<synchronous>, transform_indices = @transform_8, window_bounds = array<i64: 128, 32>}, {pipeline_mode = #tpu.pipeline_mode<synchronous>, transform_indices = @transform_9, window_bounds = array<i64: 1, 32>}, {pipeline_mode = #tpu.pipeline_mode<synchronous>, transform_indices = @transform_10, window_bounds = array<i64: 32, 128>}, {pipeline_mode = #tpu.pipeline_mode<synchronous>, transform_indices = @transform_11, window_bounds = array<i64: 1, 128>}, {transform_indices = @transform_12, window_bounds = array<i64: 304, 128>}, {pipeline_mode = #tpu.pipeline_mode<synchronous>, transform_indices = @transform_13, window_bounds = array<i64: 32, 128>}]} {
    %c0_i32 = arith.constant 0 : i32
    %0 = arith.cmpi eq, %arg0, %c0_i32 : i32
    %1 = arith.extui %0 : i1 to i32
    %c0_i32_0 = arith.constant 0 : i32
    %2 = arith.cmpi ne, %1, %c0_i32_0 : i32
    scf.if %2 {
      %cst_23 = arith.constant 0.000000e+00 : f32
      %33 = vector.broadcast %cst_23 : f32 to vector<32x128xf32>
      %c0_24 = arith.constant 0 : index
      %c0_25 = arith.constant 0 : index
      %34 = vector.load %arg15[%c0_24, %c0_25] : memref<32x128xf32, #tpu.memory_space<vmem>>, vector<32x128xf32>
      tpu.vector_store %arg15[%c0_24, %c0_25], %33 {strides = array<i32>} : memref<32x128xf32, #tpu.memory_space<vmem>>, vector<32x128xf32>,
      %c0_26 = arith.constant 0 : index
      %c0_27 = arith.constant 0 : index
      %35 = vector.load %arg3[%c0_26, %c0_27] : memref<32x8xbf16, #tpu.memory_space<vmem>>, vector<32x8xbf16>
      %c0_28 = arith.constant 0 : index
      %c0_29 = arith.constant 0 : index
      %36 = vector.load %arg8[%c0_28, %c0_29] : memref<8x32xbf16, #tpu.memory_space<vmem>>, vector<8x32xbf16>
      %cst_30 = arith.constant dense<0.000000e+00> : vector<32x32xf32>
      %37 = tpu.matmul %35, %36, %cst_30 {dimension_numbers = #tpu.dot_dimension_numbers<[1], [0], [0], [1], [0, 0, 1, 1], [], []>} : vector<32x8xbf16>, vector<8x32xbf16>, vector<32x32xf32> -> vector<32x32xf32>
      %c0_31 = arith.constant 0 : index
      %c0_32 = arith.constant 0 : index
      %38 = vector.load %arg10[%c0_31, %c0_32] : memref<1x32xf32, #tpu.memory_space<vmem>>, vector<1x32xf32>
      %39 = vector.broadcast %38 : vector<1x32xf32> to vector<32x32xf32>
      %40 = arith.addf %37, %39 : vector<32x32xf32>
      %c0_33 = arith.constant 0 : index
      %c0_34 = arith.constant 0 : index
      %41 = vector.load %arg16[%c0_33, %c0_34] : memref<32x32xf32, #tpu.memory_space<vmem>>, vector<32x32xf32>
      tpu.vector_store %arg16[%c0_33, %c0_34], %40 {strides = array<i32>} : memref<32x32xf32, #tpu.memory_space<vmem>>, vector<32x32xf32>,
    } else {
    }
    %c0 = arith.constant 0 : index
    %c0_1 = arith.constant 0 : index
    %3 = vector.load %arg2[%c0, %c0_1] : memref<304x20xbf16, #tpu.memory_space<vmem>>, vector<304x20xbf16>
    %c0_2 = arith.constant 0 : index
    %c0_3 = arith.constant 0 : index
    %4 = vector.load %arg4[%c0_2, %c0_3] : memref<20x32xbf16, #tpu.memory_space<vmem>>, vector<20x32xbf16>
    %cst = arith.constant dense<0.000000e+00> : vector<304x32xf32>
    %5 = tpu.matmul %3, %4, %cst {dimension_numbers = #tpu.dot_dimension_numbers<[1], [0], [0], [1], [0, 0, 1, 1], [], []>} : vector<304x20xbf16>, vector<20x32xbf16>, vector<304x32xf32> -> vector<304x32xf32>
    %c0_4 = arith.constant 0 : index
    %c0_5 = arith.constant 0 : index
    %6 = vector.load %arg5[%c0_4, %c0_5] : memref<1x32xf32, #tpu.memory_space<vmem>>, vector<1x32xf32>
    %7 = vector.broadcast %6 : vector<1x32xf32> to vector<304x32xf32>
    %8 = arith.addf %5, %7 : vector<304x32xf32>
    %cst_6 = arith.constant 0.000000e+00 : f32
    %9 = vector.broadcast %cst_6 : f32 to vector<304x32xf32>
    %10 = arith.maximumf %8, %9 : vector<304x32xf32>
    %11 = arith.truncf %10 : vector<304x32xf32> to vector<304x32xbf16>
    %c0_7 = arith.constant 0 : index
    %c0_8 = arith.constant 0 : index
    %12 = vector.load %arg6[%c0_7, %c0_8] : memref<32x128xbf16, #tpu.memory_space<vmem>>, vector<32x128xbf16>
    %cst_9 = arith.constant dense<0.000000e+00> : vector<304x128xf32>
    %13 = tpu.matmul %11, %12, %cst_9 {dimension_numbers = #tpu.dot_dimension_numbers<[1], [0], [0], [1], [0, 0, 1, 1], [], []>} : vector<304x32xbf16>, vector<32x128xbf16>, vector<304x128xf32> -> vector<304x128xf32>
    %c0_10 = arith.constant 0 : index
    %c0_11 = arith.constant 0 : index
    %14 = vector.load %arg7[%c0_10, %c0_11] : memref<1x128xf32, #tpu.memory_space<vmem>>, vector<1x128xf32>
    %15 = vector.broadcast %14 : vector<1x128xf32> to vector<304x128xf32>
    %16 = arith.addf %13, %15 : vector<304x128xf32>
    %17 = arith.truncf %16 : vector<304x128xf32> to vector<304x128xbf16>
    %c0_12 = arith.constant 0 : index
    %c0_13 = arith.constant 0 : index
    %18 = vector.load %arg13[%c0_12, %c0_13] : memref<304x128xbf16, #tpu.memory_space<vmem>>, vector<304x128xbf16>
    tpu.vector_store %arg13[%c0_12, %c0_13], %17 {strides = array<i32>} : memref<304x128xbf16, #tpu.memory_space<vmem>>, vector<304x128xbf16>,
    %19 = tpu.iota {dimensions = array<i32: 0>} : vector<32x304xi32>
    %c0_14 = arith.constant 0 : index
    %c0_15 = arith.constant 0 : index
    %20 = vector.load %arg1[%c0_14, %c0_15] : memref<1x304xi32, #tpu.memory_space<vmem>>, vector<1x304xi32>
    %21 = vector.broadcast %20 : vector<1x304xi32> to vector<32x304xi32>
    %22 = arith.cmpi eq, %19, %21 : vector<32x304xi32>
    %23 = arith.extui %22 : vector<32x304xi1> to vector<32x304xi32>
    %24 = arith.sitofp %23 : vector<32x304xi32> to vector<32x304xf32>
    %25 = arith.truncf %24 : vector<32x304xf32> to vector<32x304xbf16>
    %c0_16 = arith.constant 0 : index
    %c0_17 = arith.constant 0 : index
    %26 = vector.load %arg15[%c0_16, %c0_17] : memref<32x128xf32, #tpu.memory_space<vmem>>, vector<32x128xf32>
    %cst_18 = arith.constant dense<0.000000e+00> : vector<32x128xf32>
    %27 = tpu.matmul %25, %17, %cst_18 {dimension_numbers = #tpu.dot_dimension_numbers<[1], [0], [0], [1], [0, 0, 1, 1], [], []>} : vector<32x304xbf16>, vector<304x128xbf16>, vector<32x128xf32> -> vector<32x128xf32>
    %28 = arith.addf %26, %27 : vector<32x128xf32>
    %c0_19 = arith.constant 0 : index
    %c0_20 = arith.constant 0 : index
    %29 = vector.load %arg15[%c0_19, %c0_20] : memref<32x128xf32, #tpu.memory_space<vmem>>, vector<32x128xf32>
    tpu.vector_store %arg15[%c0_19, %c0_20], %28 {strides = array<i32>} : memref<32x128xf32, #tpu.memory_space<vmem>>, vector<32x128xf32>,
    %c0_i32_21 = arith.constant 0 : i32
    %30 = arith.cmpi eq, %arg0, %c0_i32_21 : i32
    %31 = arith.extui %30 : i1 to i32
    %c0_i32_22 = arith.constant 0 : i32
    %32 = arith.cmpi ne, %31, %c0_i32_22 : i32
    scf.if %32 {
      %c0_23 = arith.constant 0 : index
      %c0_24 = arith.constant 0 : index
      %33 = vector.load %arg15[%c0_23, %c0_24] : memref<32x128xf32, #tpu.memory_space<vmem>>, vector<32x128xf32>
      %34 = vector.extract_strided_slice %33 {offsets = [0, 127], sizes = [32, 1], strides = [1, 1]} : vector<32x128xf32> to vector<32x1xf32>
      %cst_25 = arith.constant 1.000000e+00 : f32
      %35 = vector.broadcast %cst_25 : f32 to vector<32x1xf32>
      %36 = arith.maximumf %34, %35 : vector<32x1xf32>
      %37 = tpu.reciprocal %36 {approx = true} : vector<32x1xf32> -> vector<32x1xf32>
      %38 = vector.broadcast %37 : vector<32x1xf32> to vector<32x128xf32>
      %39 = arith.mulf %33, %38 : vector<32x128xf32>
      %40 = arith.truncf %39 : vector<32x128xf32> to vector<32x128xbf16>
      %c0_26 = arith.constant 0 : index
      %c0_27 = arith.constant 0 : index
      %41 = vector.load %arg16[%c0_26, %c0_27] : memref<32x32xf32, #tpu.memory_space<vmem>>, vector<32x32xf32>
      %c0_28 = arith.constant 0 : index
      %c0_29 = arith.constant 0 : index
      %42 = vector.load %arg9[%c0_28, %c0_29] : memref<128x32xbf16, #tpu.memory_space<vmem>>, vector<128x32xbf16>
      %cst_30 = arith.constant dense<0.000000e+00> : vector<32x32xf32>
      %43 = tpu.matmul %40, %42, %cst_30 {dimension_numbers = #tpu.dot_dimension_numbers<[1], [0], [0], [1], [0, 0, 1, 1], [], []>} : vector<32x128xbf16>, vector<128x32xbf16>, vector<32x32xf32> -> vector<32x32xf32>
      %44 = arith.addf %41, %43 : vector<32x32xf32>
      %cst_31 = arith.constant 0.000000e+00 : f32
      %45 = vector.broadcast %cst_31 : f32 to vector<32x32xf32>
      %46 = arith.maximumf %44, %45 : vector<32x32xf32>
      %47 = arith.truncf %46 : vector<32x32xf32> to vector<32x32xbf16>
      %c0_32 = arith.constant 0 : index
      %c0_33 = arith.constant 0 : index
      %48 = vector.load %arg11[%c0_32, %c0_33] : memref<32x128xbf16, #tpu.memory_space<vmem>>, vector<32x128xbf16>
      %cst_34 = arith.constant dense<0.000000e+00> : vector<32x128xf32>
      %49 = tpu.matmul %47, %48, %cst_34 {dimension_numbers = #tpu.dot_dimension_numbers<[1], [0], [0], [1], [0, 0, 1, 1], [], []>} : vector<32x32xbf16>, vector<32x128xbf16>, vector<32x128xf32> -> vector<32x128xf32>
      %c0_35 = arith.constant 0 : index
      %c0_36 = arith.constant 0 : index
      %50 = vector.load %arg12[%c0_35, %c0_36] : memref<1x128xf32, #tpu.memory_space<vmem>>, vector<1x128xf32>
      %51 = vector.broadcast %50 : vector<1x128xf32> to vector<32x128xf32>
      %52 = arith.addf %49, %51 : vector<32x128xf32>
      %53 = arith.truncf %52 : vector<32x128xf32> to vector<32x128xbf16>
      %c0_37 = arith.constant 0 : index
      %c0_38 = arith.constant 0 : index
      %54 = vector.load %arg14[%c0_37, %c0_38] : memref<32x128xbf16, #tpu.memory_space<vmem>>, vector<32x128xbf16>
      tpu.vector_store %arg14[%c0_37, %c0_38], %53 {strides = array<i32>} : memref<32x128xbf16, #tpu.memory_space<vmem>>, vector<32x128xbf16>,
    } else {
    }
    return
  }
  func.func @transform_0(%arg0: i32) -> (i32, i32) {
    %c0_i32 = arith.constant 0 : i32
    %c0_i32_0 = arith.constant 0 : i32
    return %c0_i32, %arg0 : i32, i32
  }
  func.func @transform_1(%arg0: i32) -> (i32, i32) {
    %c0_i32 = arith.constant 0 : i32
    %c0_i32_0 = arith.constant 0 : i32
    return %arg0, %c0_i32 : i32, i32
  }
  func.func @transform_2(%arg0: i32) -> (i32, i32) {
    %c0_i32 = arith.constant 0 : i32
    %c0_i32_0 = arith.constant 0 : i32
    %c0_i32_1 = arith.constant 0 : i32
    return %c0_i32, %c0_i32_0 : i32, i32
  }
  func.func @transform_3(%arg0: i32) -> (i32, i32) {
    %c0_i32 = arith.constant 0 : i32
    %c0_i32_0 = arith.constant 0 : i32
    %c0_i32_1 = arith.constant 0 : i32
    return %c0_i32, %c0_i32_0 : i32, i32
  }
  func.func @transform_4(%arg0: i32) -> (i32, i32) {
    %c0_i32 = arith.constant 0 : i32
    %c0_i32_0 = arith.constant 0 : i32
    %c0_i32_1 = arith.constant 0 : i32
    return %c0_i32, %c0_i32_0 : i32, i32
  }
  func.func @transform_5(%arg0: i32) -> (i32, i32) {
    %c0_i32 = arith.constant 0 : i32
    %c0_i32_0 = arith.constant 0 : i32
    %c0_i32_1 = arith.constant 0 : i32
    return %c0_i32, %c0_i32_0 : i32, i32
  }
  func.func @transform_6(%arg0: i32) -> (i32, i32) {
    %c0_i32 = arith.constant 0 : i32
    %c0_i32_0 = arith.constant 0 : i32
    %c0_i32_1 = arith.constant 0 : i32
    return %c0_i32, %c0_i32_0 : i32, i32
  }
  func.func @transform_7(%arg0: i32) -> (i32, i32) {
    %c0_i32 = arith.constant 0 : i32
    %c0_i32_0 = arith.constant 0 : i32
    %c0_i32_1 = arith.constant 0 : i32
    return %c0_i32, %c0_i32_0 : i32, i32
  }
  func.func @transform_8(%arg0: i32) -> (i32, i32) {
    %c0_i32 = arith.constant 0 : i32
    %c0_i32_0 = arith.constant 0 : i32
    %c0_i32_1 = arith.constant 0 : i32
    return %c0_i32, %c0_i32_0 : i32, i32
  }
  func.func @transform_9(%arg0: i32) -> (i32, i32) {
    %c0_i32 = arith.constant 0 : i32
    %c0_i32_0 = arith.constant 0 : i32
    %c0_i32_1 = arith.constant 0 : i32
    return %c0_i32, %c0_i32_0 : i32, i32
  }
  func.func @transform_10(%arg0: i32) -> (i32, i32) {
    %c0_i32 = arith.constant 0 : i32
    %c0_i32_0 = arith.constant 0 : i32
    %c0_i32_1 = arith.constant 0 : i32
    return %c0_i32, %c0_i32_0 : i32, i32
  }
  func.func @transform_11(%arg0: i32) -> (i32, i32) {
    %c0_i32 = arith.constant 0 : i32
    %c0_i32_0 = arith.constant 0 : i32
    %c0_i32_1 = arith.constant 0 : i32
    return %c0_i32, %c0_i32_0 : i32, i32
  }
  func.func @transform_12(%arg0: i32) -> (i32, i32) {
    %c0_i32 = arith.constant 0 : i32
    %c0_i32_0 = arith.constant 0 : i32
    return %arg0, %c0_i32 : i32, i32
  }
  func.func @transform_13(%arg0: i32) -> (i32, i32) {
    %c0_i32 = arith.constant 0 : i32
    %c0_i32_0 = arith.constant 0 : i32
    %c0_i32_1 = arith.constant 0 : i32
    return %c0_i32, %c0_i32_0 : i32, i32
  }
}

</mosaic_0001>

<bundles_post_ra>
// kernel: _graphnet_forward.1
= control target key start
LH: loop header
LB: loop body
LE: loop exit
PB: predicated region body
PF: predicated region fallthrough
CT: control target
= control target key end

     0   :  { %vm81_vm0 = vcmask 1043456   ;;  %vm74_vm1 = vcmask 64512   ;;  %vm349_vm2 = vcmask 1041408   ;;  %v2163_v1 = vmov 0.0   ;;  %s2712_s7 = inlined_call_operand.vmem [shape: bf16[8,32], index: 7, kind: input, shape index: {}]   ;;  %s2713_s2 = inlined_call_operand.vmem [shape: bf16[32,8], index: 2, kind: input, shape index: {}]   ;;  %s2714_s3 = inlined_call_operand.vmem [shape: bf16[20,32], index: 3, kind: input, shape index: {}]   ;;  %s2715_s1 = inlined_call_operand.vmem [shape: bf16[304,20], index: 1, kind: input, shape index: {}]   ;;  %s2716_s5 = inlined_call_operand.vmem [shape: bf16[32,128], index: 5, kind: input, shape index: {}]   ;;  %s2717_s9 = inlined_call_operand.vmem [shape: f32[1,32], index: 9, kind: input, shape index: {}]   ;;  %s2718_s4 = inlined_call_operand.vmem [shape: f32[1,32], index: 4, kind: input, shape index: {}]   ;;  %s2719_s6 = inlined_call_operand.vmem [shape: f32[1,128], index: 6, kind: input, shape index: {}]   ;;  %s2720_s12 = inlined_call_operand.vmem [shape: bf16[304,128], index: 12, kind: output, shape index: {0}]   ;;  %s2721_s0 = inlined_call_operand.vmem [shape: s32[1,304], index: 0, kind: input, shape index: {}]   ;;  %s2722_s8 = inlined_call_operand.vmem [shape: bf16[128,32], index: 8, kind: input, shape index: {}]   ;;  %s2723_s10 = inlined_call_operand.vmem [shape: bf16[32,128], index: 10, kind: input, shape index: {}]   ;;  %s2724_s11 = inlined_call_operand.vmem [shape: f32[1,128], index: 11, kind: input, shape index: {}]   ;;  %s2725_s13 = inlined_call_operand.vmem [shape: bf16[32,128], index: 13, kind: output, shape index: {1}]  }
   0x1   :  { %v56_v0 = vld [vmem:[%s2712_s7] sm:$0xf]  ;;  %2109 = vmatprep.subr.bf16.mxu1 %v2163_v1  ;;  %v2121_v4 = vld [vmem:[%s2713_s2 + $0x8] sm:$0xff]   ;;  %vm2164_vm3 = vmmov 0   ;;  %vm291_vm4 = vcmask 162816   ;;  %v2126_v10 = vld [vmem:[%s2715_s1 + $0x10] sm:$0xff]  }
   0x2   :  { %2113 = vmatprep.subr.msk.bf16.mxu0 %vm81_vm0, %v56_v0  ;;  %v83_v2 = vsel %vm81_vm0, %v56_v0, 0  ;;  %v2120_v3 = vld [vmem:[%s2713_s2] sm:$0xff]   ;;  %v2122_v5 = vld [vmem:[%s2714_s3 + $0x8] ss:$0 sps:$4 sm:$0x33]   ;;  %1919 = vmatprep.mubr.msk.bf16.mxu1 %vm2164_vm3, %v2163_v1  ;;  %v2127_v11 = vld [vmem:[%s2715_s1 + $0x18] sm:$0xff]  }
   0x3   :  { %1906 = vmatpush3.bf16.msra.mxu0 %v83_v2  ;;  %1907 = vmatprep.mubr.msk.bf16.mxu0 %vm74_vm1, %v2120_v3  ;;  %v351_v6 = vsel %vm349_vm2, %v2122_v5, 0  ;;  %v2123_v7 = vld [vmem:[%s2714_s3] sm:$0xff]   ;;  %v2125_v8 = vld [vmem:[%s2715_s1 + $0x8] sm:$0xff]   ;;  %v2130_v14 = vld [vmem:[%s2715_s1 + $0x30] sm:$0xff]   ;;  %vm134_vm5 = vcmask 261120   ;;  %vm1115_vm14 = vcmask 392192  }
   0x4   :  { %1911 = vmatprep.subr.bf16.mxu0 %v2163_v1  ;;  %2111 = vmatpush3.bf16.msra.mxu1 %v351_v6  ;;  %v2124_v9 = vld [vmem:[%s2715_s1] sm:$0xff]   ;;  %v2129_v13 = vld [vmem:[%s2715_s1 + $0x28] sm:$0xff]   ;;  %v2131_v15 = vld [vmem:[%s2715_s1 + $0x38] sm:$0xff]  }
   0x5   :  { %2110 = vmatprep.subr.bf16.mxu1 %v2163_v1  ;;  %v2128_v12 = vld [vmem:[%s2715_s1 + $0x20] sm:$0xff]   ;;  %v2133_v17 = vld [vmem:[%s2715_s1 + $0x48] sm:$0xff]   ;;  %v2134_v19 = vld [vmem:[%s2715_s1 + $0x50] sm:$0xff]  }
   0x6   :  { %1908 = vmatmul.mubr.msk.bf16.vlgmr.msra.gmra.mxu0 %vm74_vm1, %v2121_v4  ;;  %v2132_v16 = vld [vmem:[%s2715_s1 + $0x40] sm:$0xff]   ;;  %v2143_v18 = vld [vmem:[%s2716_s5 + $0x8] sm:$0xff]   ;;  %v2135_v21 = vld [vmem:[%s2715_s1 + $0x58] sm:$0xff]  }
   0x7   :  { %1912 = vmatpush3.bf16.msra.mxu0 %v351_v6  ;;  %1915 = vmatprep.mubr.msk.bf16.mxu0 %vm2164_vm3, %v2163_v1  ;;  %v2144_v20 = vld [vmem:[%s2716_s5] sm:$0xff]   ;;  %v2137_v23 = vld [vmem:[%s2715_s1 + $0x68] sm:$0xff]   ;;  %v2138_v24 = vld [vmem:[%s2715_s1 + $0x70] sm:$0xff]  }
   0x8   :  { %1913 = vmatprep.subr.bf16.mxu0 %v2163_v1  ;;  %2112 = vmatpush3.bf16.msra.mxu1 %v2123_v7  ;;  %v2136_v22 = vld [vmem:[%s2715_s1 + $0x60] sm:$0xff]   ;;  %v2139_v25 = vld [vmem:[%s2715_s1 + $0x78] sm:$0xff]   ;;  %v2141_v27 = vld [vmem:[%s2715_s1 + $0x88] sm:$0xff]  }
   0x9   :  { %v2140_v26 = vld [vmem:[%s2715_s1 + $0x80] sm:$0xff]   ;;  %v2142_v28 = vld [vmem:[%s2715_s1 + $0x90] sm:$0xff]  }
   0xa   :  { %v1502_v29 = vld [vmem:[%s2717_s9] ss:$0 sm:$0xff] }
   0xb   :  { %1914 = vmatpush3.bf16.msra.mxu0 %v2123_v7  ;;  %1920 = vmatmul.mubr.msk.bf16.vlgmr.msra.gmra.mxu1 %vm291_vm4, %v2125_v8  ;;  %v2391_v39 = vld [vmem:[%s2718_s4] ss:$0 sm:$0xff] }
   0xc   :  { %1991 = vmatprep.subr.bf16.mxu0 %v2163_v1  ;;  %1923 = vmatprep.mubr.msk.bf16.mxu1 %vm2164_vm3, %v2163_v1 }
   0xe   :  { %1916 = vmatmul.mubr.msk.bf16.vlgmr.msra.gmra.mxu0 %vm291_vm4, %v2124_v9 }
   0xf   :  { %1995 = vmatprep.mubr.msk.bf16.mxu0 %vm2164_vm3, %v2163_v1  ;;  %1992 = vmatpush3.bf16.msra.mxu0 %v2143_v18 }
  0x10   :  { %1993 = vmatprep.subr.bf16.mxu0 %v2163_v1 }
  0x13   :  { %1924 = vmatmul.mubr.msk.bf16.gmra.mxu1 %vm291_vm4, %v2126_v10  ;;  %1994 = vmatpush3.bf16.msra.mxu0 %v2144_v20 }
  0x14   :  { %1927 = vmatprep.mubr.msk.bf16.mxu1 %vm2164_vm3, %v2163_v1 }
  0x1b   :  { %1928 = vmatmul.mubr.msk.bf16.gmra.mxu1 %vm291_vm4, %v2127_v11 }
  0x1c   :  { %1931 = vmatprep.mubr.msk.bf16.mxu1 %vm2164_vm3, %v2163_v1 }
  0x23   :  { %1932 = vmatmul.mubr.msk.bf16.gmra.mxu1 %vm291_vm4, %v2128_v12 }
  0x24   :  { %1935 = vmatprep.mubr.msk.bf16.mxu1 %vm2164_vm3, %v2163_v1 }
  0x2b   :  { %1936 = vmatmul.mubr.msk.bf16.gmra.mxu1 %vm291_vm4, %v2129_v13 }
  0x2c   :  { %1939 = vmatprep.mubr.msk.bf16.mxu1 %vm2164_vm3, %v2163_v1 }
  0x33   :  { %1940 = vmatmul.mubr.msk.bf16.gmra.mxu1 %vm291_vm4, %v2130_v14 }
  0x34   :  { %1943 = vmatprep.mubr.msk.bf16.mxu1 %vm2164_vm3, %v2163_v1 }
  0x3b   :  { %1944 = vmatmul.mubr.msk.bf16.gmra.mxu1 %vm291_vm4, %v2131_v15 }
  0x3c   :  { %1947 = vmatprep.mubr.msk.bf16.mxu1 %vm2164_vm3, %v2163_v1 }
  0x43   :  { %1948 = vmatmul.mubr.msk.bf16.gmra.mxu1 %vm291_vm4, %v2132_v16 }
  0x44   :  { %1951 = vmatprep.mubr.msk.bf16.mxu1 %vm2164_vm3, %v2163_v1 }
  0x4b   :  { %1952 = vmatmul.mubr.msk.bf16.gmra.mxu1 %vm291_vm4, %v2133_v17 }
  0x4c   :  { %1955 = vmatprep.mubr.msk.bf16.mxu1 %vm2164_vm3, %v2163_v1 }
  0x53   :  { %1956 = vmatmul.mubr.msk.bf16.gmra.mxu1 %vm291_vm4, %v2134_v19 }
  0x54   :  { %1959 = vmatprep.mubr.msk.bf16.mxu1 %vm2164_vm3, %v2163_v1 }
  0x5b   :  { %1960 = vmatmul.mubr.msk.bf16.gmra.mxu1 %vm291_vm4, %v2135_v21 }
  0x5c   :  { %1963 = vmatprep.mubr.msk.bf16.mxu1 %vm2164_vm3, %v2163_v1 }
  0x63   :  { %1964 = vmatmul.mubr.msk.bf16.gmra.mxu1 %vm291_vm4, %v2136_v22 }
  0x64   :  { %1967 = vmatprep.mubr.msk.bf16.mxu1 %vm2164_vm3, %v2163_v1 }
  0x6b   :  { %1968 = vmatmul.mubr.msk.bf16.gmra.mxu1 %vm291_vm4, %v2137_v23 }
  0x6c   :  { %1971 = vmatprep.mubr.msk.bf16.mxu1 %vm2164_vm3, %v2163_v1 }
  0x73   :  { %1972 = vmatmul.mubr.msk.bf16.gmra.mxu1 %vm291_vm4, %v2138_v24 }
  0x74   :  { %1975 = vmatprep.mubr.msk.bf16.mxu1 %vm2164_vm3, %v2163_v1 }
  0x7b   :  { %1976 = vmatmul.mubr.msk.bf16.gmra.mxu1 %vm291_vm4, %v2139_v25 }
  0x7c   :  { %1979 = vmatprep.mubr.msk.bf16.mxu1 %vm2164_vm3, %v2163_v1 }
  0x83   :  { %1980 = vmatmul.mubr.msk.bf16.gmra.mxu1 %vm291_vm4, %v2140_v26 }
  0x84   :  { %1983 = vmatprep.mubr.msk.bf16.mxu1 %vm2164_vm3, %v2163_v1 }
  0x8b   :  { %1984 = vmatmul.mubr.msk.bf16.gmra.mxu1 %vm291_vm4, %v2141_v27 }
  0x8c   :  { %1987 = vmatprep.mubr.msk.bf16.mxu1 %vm2164_vm3, %v2163_v1 }
  0x93   :  { %1988 = vmatmul.mubr.msk.bf16.gmra.mxu1 %vm291_vm4, %v2142_v28 }
  0xc6   :  { %v1909_v30 = vpop.f32.mrf.mxu0 }
  0xc7   :  { %v128_v31 = vadd.f32 %v1909_v30, %v1502_v29 }
  0xc8   :  { %v119_v32 = vpop.f32.mrf.mxu0 }
  0xc9   :  { %137 = vst.msk [vmem:[#allocation3 + $0x10] sm:$0xff] %vm134_vm5, %v128_v31  ;;  %v120_v33 = vadd.f32 %v1502_v29, %v119_v32 }
  0xca   :  { %v1910_v34 = vpop.f32.mrf.mxu0 }
  0xcb   :  { %135 = vst.msk [vmem:[#allocation3] sm:$0xff] %vm134_vm5, %v120_v33  ;;  %v131_v35 = vadd.f32 %v1910_v34, %v1502_v29  ;;  %v395_v38 = vpop.f32.mrf.mxu1 }
  0xcc   :  { %v122_v36 = vpop.f32.mrf.mxu0  ;;  %v396_v52 = vadd.f32 %v2391_v39, %v395_v38 }
  0xcd   :  { %138 = vst.msk [vmem:[#allocation3 + $0x18] sm:$0xff] %vm134_vm5, %v131_v35  ;;  %v123_v37 = vadd.f32 %v1502_v29, %v122_v36  ;;  %v1921_v41 = vpop.f32.mrf.mxu1 }
  0xce   :  { %v387_v40 = vpop.f32.mrf.mxu0  ;;  %v540_v57 = vmax.f32 %v396_v52, 0.0 }
  0xcf   :  { %136 = vst.msk [vmem:[#allocation3 + $0x8] sm:$0xff] %vm134_vm5, %v123_v37  ;;  %v388_v43 = vadd.f32 %v2391_v39, %v387_v40  ;;  %v398_v44 = vpop.f32.mrf.mxu1 }
  0xd0   :  { %v1917_v42 = vpop.f32.mrf.mxu0  ;;  %v399_v54 = vadd.f32 %v2391_v39, %v398_v44 }
  0xd1   :  { %v1922_v47 = vpop.f32.mrf.mxu1  ;;  %v538_v49 = vmax.f32 %v388_v43, 0.0 }
  0xd2   :  { %v390_v45 = vpop.f32.mrf.mxu0  ;;  %v541_v58 = vmax.f32 %v399_v54, 0.0 }
  0xd3   :  { %v391_v46 = vadd.f32 %v2391_v39, %v390_v45  ;;  %v403_v51 = vpop.f32.mrf.mxu1 }
  0xd4   :  { %v1918_v48 = vpop.f32.mrf.mxu0  ;;  %v577_v61 = vpack.c.bf16 %v541_v58, %v540_v57  ;;  %v404_v62 = vadd.f32 %v2391_v39, %v403_v51 }
  0xd5   :  { %v539_v50 = vmax.f32 %v391_v46, 0.0  ;;  %v1925_v55 = vpop.f32.mrf.mxu1 }
  0xd6   :  { %v542_v3 = vmax.f32 %v404_v62, 0.0 }
  0xd7   :  { %v576_v53 = vpack.c.bf16 %v539_v50, %v538_v49  ;;  %v406_v56 = vpop.f32.mrf.mxu1 }
  0xd8   :  { %v407_v63 = vadd.f32 %v2391_v39, %v406_v56 }
  0xd9   :  { %1996 = vmatmul.mubr.msk.bf16.vlgmr.msra.gmra.mxu0 %vm134_vm5, %v576_v53  ;;  %v1926_v59 = vpop.f32.mrf.mxu1 }
  0xda   :  { %1999 = vmatprep.mubr.msk.bf16.mxu0 %vm2164_vm3, %v2163_v1  ;;  %v543_v4 = vmax.f32 %v407_v63, 0.0 }
  0xdb   :  { %v411_v60 = vpop.f32.mrf.mxu1 }
  0xdc   :  { %v578_v7 = vpack.c.bf16 %v543_v4, %v542_v3  ;;  %v412_v8 = vadd.f32 %v2391_v39, %v411_v60 }
  0xdd   :  { %v1929_v0 = vpop.f32.mrf.mxu1 }
  0xde   :  { %v544_v12 = vmax.f32 %v412_v8, 0.0 }
  0xdf   :  { %v414_v2 = vpop.f32.mrf.mxu1 }
  0xe0   :  { %v415_v9 = vadd.f32 %v2391_v39, %v414_v2 }
  0xe1   :  { %2000 = vmatmul.mubr.msk.bf16.gmra.mxu0 %vm134_vm5, %v577_v61  ;;  %v1930_v5 = vpop.f32.mrf.mxu1 }
  0xe2   :  { %2003 = vmatprep.mubr.msk.bf16.mxu0 %vm2164_vm3, %v2163_v1  ;;  %v545_v13 = vmax.f32 %v415_v9, 0.0 }
  0xe3   :  { %v419_v6 = vpop.f32.mrf.mxu1 }
  0xe4   :  { %v579_v16 = vpack.c.bf16 %v545_v13, %v544_v12  ;;  %v420_v17 = vadd.f32 %v2391_v39, %v419_v6 }
  0xe5   :  { %v1933_v10 = vpop.f32.mrf.mxu1 }
  0xe6   :  { %v546_v21 = vmax.f32 %v420_v17, 0.0 }
  0xe7   :  { %v422_v11 = vpop.f32.mrf.mxu1 }
  0xe8   :  { %v423_v18 = vadd.f32 %v2391_v39, %v422_v11 }
  0xe9   :  { %2004 = vmatmul.mubr.msk.bf16.gmra.mxu0 %vm134_vm5, %v578_v7  ;;  %v1934_v14 = vpop.f32.mrf.mxu1 }
  0xea   :  { %2007 = vmatprep.mubr.msk.bf16.mxu0 %vm2164_vm3, %v2163_v1  ;;  %v547_v22 = vmax.f32 %v423_v18, 0.0 }
  0xeb   :  { %v427_v15 = vpop.f32.mrf.mxu1 }
  0xec   :  { %v580_v25 = vpack.c.bf16 %v547_v22, %v546_v21  ;;  %v428_v26 = vadd.f32 %v2391_v39, %v427_v15 }
  0xed   :  { %v1937_v19 = vpop.f32.mrf.mxu1 }
  0xee   :  { %v548_v30 = vmax.f32 %v428_v26, 0.0 }
  0xef   :  { %v430_v20 = vpop.f32.mrf.mxu1 }
  0xf0   :  { %v431_v27 = vadd.f32 %v2391_v39, %v430_v20 }
  0xf1   :  { %2008 = vmatmul.mubr.msk.bf16.gmra.mxu0 %vm134_vm5, %v579_v16  ;;  %v1938_v23 = vpop.f32.mrf.mxu1 }
  0xf2   :  { %2011 = vmatprep.mubr.msk.bf16.mxu0 %vm2164_vm3, %v2163_v1  ;;  %v549_v31 = vmax.f32 %v431_v27, 0.0 }
  0xf3   :  { %v435_v24 = vpop.f32.mrf.mxu1 }
  0xf4   :  { %v581_v34 = vpack.c.bf16 %v549_v31, %v548_v30  ;;  %v436_v35 = vadd.f32 %v2391_v39, %v435_v24 }
  0xf5   :  { %v1941_v28 = vpop.f32.mrf.mxu1 }
  0xf6   :  { %v550_v40 = vmax.f32 %v436_v35, 0.0 }
  0xf7   :  { %v438_v29 = vpop.f32.mrf.mxu1 }
  0xf8   :  { %v439_v36 = vadd.f32 %v2391_v39, %v438_v29 }
  0xf9   :  { %2012 = vmatmul.mubr.msk.bf16.gmra.mxu0 %vm134_vm5, %v580_v25  ;;  %v1942_v32 = vpop.f32.mrf.mxu1 }
  0xfa   :  { %2015 = vmatprep.mubr.msk.bf16.mxu0 %vm2164_vm3, %v2163_v1  ;;  %v551_v41 = vmax.f32 %v439_v36, 0.0 }
  0xfb   :  { %v443_v33 = vpop.f32.mrf.mxu1 }
  0xfc   :  { %v582_v44 = vpack.c.bf16 %v551_v41, %v550_v40  ;;  %v444_v45 = vadd.f32 %v2391_v39, %v443_v33 }
  0xfd   :  { %v1945_v37 = vpop.f32.mrf.mxu1 }
  0xfe   :  { %v552_v49 = vmax.f32 %v444_v45, 0.0 }
  0xff   :  { %v446_v38 = vpop.f32.mrf.mxu1 }
 0x100   :  { %v447_v46 = vadd.f32 %v2391_v39, %v446_v38 }
 0x101   :  { %2016 = vmatmul.mubr.msk.bf16.gmra.mxu0 %vm134_vm5, %v581_v34  ;;  %v1946_v42 = vpop.f32.mrf.mxu1 }
 0x102   :  { %2019 = vmatprep.mubr.msk.bf16.mxu0 %vm2164_vm3, %v2163_v1  ;;  %v553_v50 = vmax.f32 %v447_v46, 0.0 }
 0x103   :  { %v451_v43 = vpop.f32.mrf.mxu1 }
 0x104   :  { %v583_v53 = vpack.c.bf16 %v553_v50, %v552_v49  ;;  %v452_v54 = vadd.f32 %v2391_v39, %v451_v43 }
 0x105   :  { %v1949_v47 = vpop.f32.mrf.mxu1 }
 0x106   :  { %v554_v58 = vmax.f32 %v452_v54, 0.0 }
 0x107   :  { %v454_v48 = vpop.f32.mrf.mxu1 }
 0x108   :  { %v455_v55 = vadd.f32 %v2391_v39, %v454_v48 }
 0x109   :  { %2020 = vmatmul.mubr.msk.bf16.gmra.mxu0 %vm134_vm5, %v582_v44  ;;  %v1950_v51 = vpop.f32.mrf.mxu1 }
 0x10a   :  { %2023 = vmatprep.mubr.msk.bf16.mxu0 %vm2164_vm3, %v2163_v1  ;;  %v555_v59 = vmax.f32 %v455_v55, 0.0 }
 0x10b   :  { %v459_v52 = vpop.f32.mrf.mxu1 }
 0x10c   :  { %v584_v62 = vpack.c.bf16 %v555_v59, %v554_v58  ;;  %v460_v63 = vadd.f32 %v2391_v39, %v459_v52 }
 0x10d   :  { %v1953_v56 = vpop.f32.mrf.mxu1 }
 0x10e   :  { %v556_v4 = vmax.f32 %v460_v63, 0.0 }
 0x10f   :  { %v462_v57 = vpop.f32.mrf.mxu1 }
 0x110   :  { %v463_v0 = vadd.f32 %v2391_v39, %v462_v57 }
 0x111   :  { %2024 = vmatmul.mubr.msk.bf16.gmra.mxu0 %vm134_vm5, %v583_v53  ;;  %v1954_v60 = vpop.f32.mrf.mxu1 }
 0x112   :  { %2027 = vmatprep.mubr.msk.bf16.mxu0 %vm2164_vm3, %v2163_v1  ;;  %v557_v5 = vmax.f32 %v463_v0, 0.0 }
 0x113   :  { %v467_v61 = vpop.f32.mrf.mxu1 }
 0x114   :  { %v585_v8 = vpack.c.bf16 %v557_v5, %v556_v4  ;;  %v468_v9 = vadd.f32 %v2391_v39, %v467_v61 }
 0x115   :  { %v1957_v2 = vpop.f32.mrf.mxu1 }
 0x116   :  { %v558_v13 = vmax.f32 %v468_v9, 0.0 }
 0x117   :  { %v470_v3 = vpop.f32.mrf.mxu1 }
 0x118   :  { %v471_v10 = vadd.f32 %v2391_v39, %v470_v3 }
 0x119   :  { %2028 = vmatmul.mubr.msk.bf16.gmra.mxu0 %vm134_vm5, %v584_v62  ;;  %v1958_v6 = vpop.f32.mrf.mxu1 }
 0x11a   :  { %2031 = vmatprep.mubr.msk.bf16.mxu0 %vm2164_vm3, %v2163_v1  ;;  %v559_v14 = vmax.f32 %v471_v10, 0.0 }
 0x11b   :  { %v475_v7 = vpop.f32.mrf.mxu1 }
 0x11c   :  { %v586_v17 = vpack.c.bf16 %v559_v14, %v558_v13  ;;  %v476_v18 = vadd.f32 %v2391_v39, %v475_v7 }
 0x11d   :  { %v1961_v11 = vpop.f32.mrf.mxu1 }
 0x11e   :  { %v560_v22 = vmax.f32 %v476_v18, 0.0 }
 0x11f   :  { %v478_v12 = vpop.f32.mrf.mxu1 }
 0x120   :  { %v479_v19 = vadd.f32 %v2391_v39, %v478_v12 }
 0x121   :  { %2032 = vmatmul.mubr.msk.bf16.gmra.mxu0 %vm134_vm5, %v585_v8  ;;  %v1962_v15 = vpop.f32.mrf.mxu1 }
 0x122   :  { %2035 = vmatprep.mubr.msk.bf16.mxu0 %vm2164_vm3, %v2163_v1  ;;  %v561_v23 = vmax.f32 %v479_v19, 0.0 }
 0x123   :  { %v483_v16 = vpop.f32.mrf.mxu1 }
 0x124   :  { %v587_v26 = vpack.c.bf16 %v561_v23, %v560_v22  ;;  %v484_v27 = vadd.f32 %v2391_v39, %v483_v16 }
 0x125   :  { %v1965_v20 = vpop.f32.mrf.mxu1 }
 0x126   :  { %v562_v31 = vmax.f32 %v484_v27, 0.0 }
 0x127   :  { %v486_v21 = vpop.f32.mrf.mxu1 }
 0x128   :  { %v487_v28 = vadd.f32 %v2391_v39, %v486_v21 }
 0x129   :  { %2036 = vmatmul.mubr.msk.bf16.gmra.mxu0 %vm134_vm5, %v586_v17  ;;  %v1966_v24 = vpop.f32.mrf.mxu1 }
 0x12a   :  { %2039 = vmatprep.mubr.msk.bf16.mxu0 %vm2164_vm3, %v2163_v1  ;;  %v563_v32 = vmax.f32 %v487_v28, 0.0  ;;  %v2490_v24 = vld [vmem:[%s2719_s6] ss:$0 sm:$0xff] }
 0x12b   :  { %v491_v25 = vpop.f32.mrf.mxu1 }
 0x12c   :  { %v588_v35 = vpack.c.bf16 %v563_v32, %v562_v31  ;;  %v492_v36 = vadd.f32 %v2391_v39, %v491_v25 }
 0x12d   :  { %v1969_v29 = vpop.f32.mrf.mxu1 }
 0x12e   :  { %v564_v41 = vmax.f32 %v492_v36, 0.0 }
 0x12f   :  { %v494_v30 = vpop.f32.mrf.mxu1 }
 0x130   :  { %v495_v37 = vadd.f32 %v2391_v39, %v494_v30 }
 0x131   :  { %2040 = vmatmul.mubr.msk.bf16.gmra.mxu0 %vm134_vm5, %v587_v26  ;;  %v1970_v33 = vpop.f32.mrf.mxu1 }
 0x132   :  { %2043 = vmatprep.mubr.msk.bf16.mxu0 %vm2164_vm3, %v2163_v1  ;;  %v565_v42 = vmax.f32 %v495_v37, 0.0 }
 0x133   :  { %v499_v34 = vpop.f32.mrf.mxu1 }
 0x134   :  { %v589_v45 = vpack.c.bf16 %v565_v42, %v564_v41  ;;  %v500_v46 = vadd.f32 %v2391_v39, %v499_v34 }
 0x135   :  { %v1973_v38 = vpop.f32.mrf.mxu1 }
 0x136   :  { %v566_v50 = vmax.f32 %v500_v46, 0.0 }
 0x137   :  { %v502_v40 = vpop.f32.mrf.mxu1 }
 0x138   :  { %v503_v47 = vadd.f32 %v2391_v39, %v502_v40 }
 0x139   :  { %2044 = vmatmul.mubr.msk.bf16.gmra.mxu0 %vm134_vm5, %v588_v35  ;;  %v1974_v43 = vpop.f32.mrf.mxu1 }
 0x13a   :  { %2047 = vmatprep.mubr.msk.bf16.mxu0 %vm2164_vm3, %v2163_v1  ;;  %v567_v51 = vmax.f32 %v503_v47, 0.0 }
 0x13b   :  { %v507_v44 = vpop.f32.mrf.mxu1 }
 0x13c   :  { %v590_v54 = vpack.c.bf16 %v567_v51, %v566_v50  ;;  %v508_v55 = vadd.f32 %v2391_v39, %v507_v44  ;;  %v1051_v44 = vlaneseq  ;;  %v1056_v50 = vld [vmem:[%s2721_s0] sm:$0x7] }
 0x13d   :  { %v1977_v48 = vpop.f32.mrf.mxu1 }
 0x13e   :  { %v568_v59 = vmax.f32 %v508_v55, 0.0  ;;  %v1052_v47 = vshrl.u32 %v1051_v44, 7 }
 0x13f   :  { %v510_v49 = vpop.f32.mrf.mxu1 }
 0x140   :  { %v511_v56 = vadd.f32 %v2391_v39, %v510_v49  ;;  %v1063_v49 = vsub.s32 1, %v1052_v47  ;;  %v1059_v51 = vsub.s32 0, %v1052_v47  ;;  %v1067_v55 = vsub.s32 2, %v1052_v47 }
 0x141   :  { %2048 = vmatmul.mubr.msk.bf16.gmra.mxu0 %vm134_vm5, %v589_v45  ;;  %v1978_v52 = vpop.f32.mrf.mxu1 }
 0x142   :  { %2051 = vmatprep.mubr.msk.bf16.mxu0 %vm2164_vm3, %v2163_v1  ;;  %v569_v60 = vmax.f32 %v511_v56, 0.0 }
 0x143   :  { %v515_v53 = vpop.f32.mrf.mxu1 }
 0x144   :  { %v516_v62 = vadd.f32 %v2391_v39, %v515_v53  ;;  %v591_v2 = vpack.c.bf16 %v569_v60, %v568_v59  ;;  %v1053_v53 = vadd.s32 8, %v1052_v47  ;;  %v1068_v60 = vrot.slane %v1056_v50, %v1067_v55 }
 0x145   :  { %v1981_v57 = vpop.f32.mrf.mxu1 }
 0x146   :  { %v570_v4 = vmax.f32 %v516_v62, 0.0  ;;  %vm1071_vm12 = vcmp.eq.s32.totalorder %v1052_v47, %v1068_v60  ;;  %vm1074_vm13 = vcmp.eq.s32.totalorder %v1053_v53, %v1068_v60 }
 0x147   :  { %v518_v58 = vpop.f32.mrf.mxu1 }
 0x148   :  { %v519_v63 = vadd.f32 %v2391_v39, %v518_v58  ;;  %v1060_v58 = vrot.slane %v1056_v50, %v1059_v51 }
 0x149   :  { %2052 = vmatmul.mubr.msk.bf16.gmra.mxu0 %vm134_vm5, %v590_v54  ;;  %v1982_v61 = vpop.f32.mrf.mxu1  ;;  %v1064_v54 = vrot.slane %v1056_v50, %v1063_v49 }
 0x14a   :  { %2055 = vmatprep.mubr.msk.bf16.mxu0 %vm2164_vm3, %v2163_v1  ;;  %v571_v5 = vmax.f32 %v519_v63, 0.0  ;;  %vm1069_vm9 = vcmp.eq.s32.totalorder %v1052_v47, %v1060_v58  ;;  %vm1072_vm10 = vcmp.eq.s32.totalorder %v1053_v53, %v1060_v58  ;;  %v2165_v63 = vmov 1.0|1.0  }
 0x14b   :  { %v523_v0 = vpop.f32.mrf.mxu1  ;;  %vm1070_vm6 = vcmp.eq.s32.totalorder %v1052_v47, %v1064_v54  ;;  %vm1073_vm7 = vcmp.eq.s32.totalorder %v1053_v53, %v1064_v54  ;;  %vm2524_vm11 = vmpackc.low %vm1072_vm10, %vm1069_vm9 }
 0x14c   :  { %v592_v8 = vpack.c.bf16 %v571_v5, %v570_v4  ;;  %v524_v9 = vadd.f32 %v2391_v39, %v523_v0  ;;  %vm1620_vm8 = vmpackc.low %vm1073_vm7, %vm1070_vm6  ;;  %v1610_v4 = vsel %vm1071_vm12, 1.0, %v2163_v1  ;;  %v1613_v5 = vsel %vm1074_vm13, 1.0, %v2163_v1 }
 0x14d   :  { %v1985_v3 = vpop.f32.mrf.mxu1  ;;  %1621 = vmatprep.mubr.msk.bf16.mxu1 %vm1620_vm8, %v2165_v63 }
 0x14e   :  { %v572_v13 = vmax.f32 %v524_v9, 0.0  ;;  %v1055_v3 = vadd.s32 24, %v1052_v47 }
 0x14f   :  { %v526_v6 = vpop.f32.mrf.mxu1 }
 0x150   :  { %v527_v10 = vadd.f32 %v2391_v39, %v526_v6  ;;  %vm1080_vm0 = vcmp.eq.s32.totalorder %v1055_v3, %v1068_v60  ;;  %vm1079_vm2 = vcmp.eq.s32.totalorder %v1055_v3, %v1064_v54  ;;  %vm1078_vm6 = vcmp.eq.s32.totalorder %v1055_v3, %v1060_v58 }
 0x151   :  { %2056 = vmatmul.mubr.msk.bf16.gmra.mxu0 %vm134_vm5, %v591_v2  ;;  %v1986_v7 = vpop.f32.mrf.mxu1  ;;  %v1054_v2 = vadd.s32 16, %v1052_v47  ;;  %v2538_v9 = vsel %vm1080_vm0, 1.0, %v2163_v1 }
 0x152   :  { %2059 = vmatprep.mubr.msk.bf16.mxu0 %vm2164_vm3, %v2163_v1  ;;  %v573_v14 = vmax.f32 %v527_v10, 0.0  ;;  %v1107_v7 = vpack.c.bf16 %v1613_v5, %v1610_v4 }
 0x153   :  { %v531_v11 = vpop.f32.mrf.mxu1  ;;  %vm1077_vm15 = vcmp.eq.s32.totalorder %v1054_v2, %v1068_v60  ;;  %vm1076_vm1 = vcmp.eq.s32.totalorder %v1054_v2, %v1064_v54 }
 0x154   :  { %v593_v17 = vpack.c.bf16 %v573_v14, %v572_v13  ;;  %v532_v18 = vadd.f32 %v2391_v39, %v531_v11  ;;  %vm2545_vm4 = vmpackc.low %vm1079_vm2, %vm1076_vm1 }
 0x155   :  { %v1989_v12 = vpop.f32.mrf.mxu1 }
 0x156   :  { %v574_v20 = vmax.f32 %v532_v18, 0.0 }
 0x157   :  { %v534_v15 = vpop.f32.mrf.mxu1 }
 0x158   :  { %v535_v19 = vadd.f32 %v2391_v39, %v534_v15 }
 0x159   :  { %2060 = vmatmul.mubr.msk.bf16.gmra.mxu0 %vm134_vm5, %v592_v8  ;;  %v1990_v16 = vpop.f32.mrf.mxu1  ;;  %v2535_v8 = vsel %vm1077_vm15, 1.0, %v2163_v1 }
 0x15a   :  { %2063 = vmatprep.mubr.msk.bf16.mxu0 %vm2164_vm3, %v2163_v1  ;;  %v575_v21 = vmax.f32 %v535_v19, 0.0  ;;  %v1110_v12 = vpack.c.bf16 %v2538_v9, %v2535_v8 }
 0x15c   :  { %v594_v22 = vpack.c.bf16 %v575_v21, %v574_v20 }
 0x161   :  { %2064 = vmatmul.mubr.msk.bf16.gmra.mxu0 %vm134_vm5, %v593_v17 }
 0x162   :  { %2067 = vmatprep.mubr.msk.bf16.mxu0 %vm2164_vm3, %v2163_v1  ;;  %vm1075_vm3 = vcmp.eq.s32.totalorder %v1054_v2, %v1060_v58 }
 0x163   :  { %vm2551_vm7 = vmpackc.low %vm1078_vm6, %vm1075_vm3 }
 0x169   :  { %2068 = vmatmul.mubr.msk.bf16.gmra.mxu0 %vm134_vm5, %v594_v22 }
 0x16a   :  { %2077 = vmatprep.mubr.msk.bf16.mxu0 %vm1115_vm14, %v1107_v7 }
 0x199   :  { %v710_v23 = vpop.f32.mrf.mxu0 }
 0x19a   :  { %v711_v39 = vadd.f32 %v2490_v24, %v710_v23 }
 0x19b   :  { %v1997_v25 = vpop.f32.mrf.mxu0 }
 0x19d   :  { %v713_v26 = vpop.f32.mrf.mxu0 }
 0x19e   :  { %v714_v27 = vadd.f32 %v2490_v24, %v713_v26 }
 0x19f   :  { %v1998_v28 = vpop.f32.mrf.mxu0 }
 0x1a0   :  { %v2494_v29 = vpack.c.bf16 %v714_v27, %v711_v39 }
 0x1a1   :  { %v718_v30 = vpop.f32.mrf.mxu0 }
 0x1a2   :  { %1693 = vst [vmem:[%s2720_s12] sm:$0xff] %v2494_v29   ;;  %v719_v33 = vadd.f32 %v2490_v24, %v718_v30 }
 0x1a3   :  { %v2001_v31 = vpop.f32.mrf.mxu0 }
 0x1a5   :  { %v721_v32 = vpop.f32.mrf.mxu0 }
 0x1a6   :  { %v722_v34 = vadd.f32 %v2490_v24, %v721_v32 }
 0x1a7   :  { %v2002_v35 = vpop.f32.mrf.mxu0 }
 0x1a8   :  { %v2502_v36 = vpack.c.bf16 %v722_v34, %v719_v33 }
 0x1a9   :  { %v726_v37 = vpop.f32.mrf.mxu0 }
 0x1aa   :  { %1794 = vst [vmem:[%s2720_s12 + $0x8] sm:$0xff] %v2502_v36   ;;  %v727_v41 = vadd.f32 %v2490_v24, %v726_v37 }
 0x1ab   :  { %v2005_v38 = vpop.f32.mrf.mxu0 }
 0x1ad   :  { %v729_v40 = vpop.f32.mrf.mxu0 }
 0x1ae   :  { %v730_v42 = vadd.f32 %v2490_v24, %v729_v40 }
 0x1af   :  { %v2006_v43 = vpop.f32.mrf.mxu0 }
 0x1b0   :  { %v2510_v45 = vpack.c.bf16 %v730_v42, %v727_v41 }
 0x1b1   :  { %v734_v46 = vpop.f32.mrf.mxu0 }
 0x1b2   :  { %1795 = vst [vmem:[%s2720_s12 + $0x10] sm:$0xff] %v2510_v45   ;;  %v735_v56 = vadd.f32 %v2490_v24, %v734_v46 }
 0x1b3   :  { %v2009_v48 = vpop.f32.mrf.mxu0 }
 0x1b5   :  { %v737_v52 = vpop.f32.mrf.mxu0 }
 0x1b6   :  { %v738_v57 = vadd.f32 %v2490_v24, %v737_v52 }
 0x1b7   :  { %v2010_v59 = vpop.f32.mrf.mxu0 }
 0x1b8   :  { %v2521_v61 = vpack.c.bf16 %v738_v57, %v735_v56 }
 0x1b9   :  { %v742_v62 = vpop.f32.mrf.mxu0 }
 0x1ba   :  { %1796 = vst [vmem:[%s2720_s12 + $0x18] sm:$0xff] %v2521_v61   ;;  %v743_v10 = vadd.f32 %v2490_v24, %v742_v62 }
 0x1bb   :  { %v2013_v6 = vpop.f32.mrf.mxu0 }
 0x1bd   :  { %v745_v11 = vpop.f32.mrf.mxu0 }
 0x1be   :  { %v746_v13 = vadd.f32 %v2490_v24, %v745_v11 }
 0x1bf   :  { %v2014_v14 = vpop.f32.mrf.mxu0 }
 0x1c0   :  { %v2549_v1 = vpack.c.bf16 %v746_v13, %v743_v10 }
 0x1c1   :  { %v750_v17 = vpop.f32.mrf.mxu0 }
 0x1c2   :  { %1797 = vst [vmem:[%s2720_s12 + $0x20] sm:$0xff] %v2549_v1   ;;  %v751_v20 = vadd.f32 %v2490_v24, %v750_v17 }
 0x1c3   :  { %v2017_v18 = vpop.f32.mrf.mxu0 }
 0x1c5   :  { %v753_v19 = vpop.f32.mrf.mxu0 }
 0x1c6   :  { %v754_v21 = vadd.f32 %v2490_v24, %v753_v19 }
 0x1c7   :  { %v2018_v22 = vpop.f32.mrf.mxu0 }
 0x1c8   :  { %v2561_v23 = vpack.c.bf16 %v754_v21, %v751_v20 }
 0x1c9   :  { %v758_v25 = vpop.f32.mrf.mxu0 }
 0x1ca   :  { %1798 = vst [vmem:[%s2720_s12 + $0x28] sm:$0xff] %v2561_v23   ;;  %v759_v27 = vadd.f32 %v2490_v24, %v758_v25 }
 0x1cb   :  { %v2021_v26 = vpop.f32.mrf.mxu0 }
 0x1cd   :  { %v761_v39 = vpop.f32.mrf.mxu0 }
 0x1ce   :  { %v762_v28 = vadd.f32 %v2490_v24, %v761_v39 }
 0x1cf   :  { %v2022_v30 = vpop.f32.mrf.mxu0 }
 0x1d0   :  { %v2569_v31 = vpack.c.bf16 %v762_v28, %v759_v27 }
 0x1d1   :  { %v766_v32 = vpop.f32.mrf.mxu0 }
 0x1d2   :  { %1799 = vst [vmem:[%s2720_s12 + $0x30] sm:$0xff] %v2569_v31   ;;  %v767_v35 = vadd.f32 %v2490_v24, %v766_v32 }
 0x1d3   :  { %v2025_v33 = vpop.f32.mrf.mxu0 }
 0x1d5   :  { %v769_v34 = vpop.f32.mrf.mxu0 }
 0x1d6   :  { %v770_v37 = vadd.f32 %v2490_v24, %v769_v34 }
 0x1d7   :  { %v2026_v38 = vpop.f32.mrf.mxu0 }
 0x1d8   :  { %v2577_v40 = vpack.c.bf16 %v770_v37, %v767_v35 }
 0x1d9   :  { %v774_v41 = vpop.f32.mrf.mxu0 }
 0x1da   :  { %1800 = vst [vmem:[%s2720_s12 + $0x38] sm:$0xff] %v2577_v40   ;;  %v775_v44 = vadd.f32 %v2490_v24, %v774_v41 }
 0x1db   :  { %v2029_v42 = vpop.f32.mrf.mxu0 }
 0x1dd   :  { %v777_v43 = vpop.f32.mrf.mxu0 }
 0x1de   :  { %v778_v46 = vadd.f32 %v2490_v24, %v777_v43 }
 0x1df   :  { %v2030_v47 = vpop.f32.mrf.mxu0 }
 0x1e0   :  { %v2585_v48 = vpack.c.bf16 %v778_v46, %v775_v44 }
 0x1e1   :  { %v782_v49 = vpop.f32.mrf.mxu0 }
 0x1e2   :  { %1801 = vst [vmem:[%s2720_s12 + $0x40] sm:$0xff] %v2585_v48   ;;  %v783_v52 = vadd.f32 %v2490_v24, %v782_v49 }
 0x1e3   :  { %v2033_v50 = vpop.f32.mrf.mxu0 }
 0x1e5   :  { %v785_v51 = vpop.f32.mrf.mxu0 }
 0x1e6   :  { %v786_v53 = vadd.f32 %v2490_v24, %v785_v51 }
 0x1e7   :  { %v2034_v54 = vpop.f32.mrf.mxu0 }
 0x1e8   :  { %v2593_v55 = vpack.c.bf16 %v786_v53, %v783_v52 }
 0x1e9   :  { %v790_v56 = vpop.f32.mrf.mxu0 }
 0x1ea   :  { %1802 = vst [vmem:[%s2720_s12 + $0x48] sm:$0xff] %v2593_v55   ;;  %v791_v59 = vadd.f32 %v2490_v24, %v790_v56 }
 0x1eb   :  { %v2037_v57 = vpop.f32.mrf.mxu0 }
 0x1ed   :  { %v793_v58 = vpop.f32.mrf.mxu0 }
 0x1ee   :  { %v794_v60 = vadd.f32 %v2490_v24, %v793_v58 }
 0x1ef   :  { %v2038_v62 = vpop.f32.mrf.mxu0 }
 0x1f0   :  { %v2601_v2 = vpack.c.bf16 %v794_v60, %v791_v59 }
 0x1f1   :  { %v798_v3 = vpop.f32.mrf.mxu0 }
 0x1f2   :  { %1803 = vst [vmem:[%s2720_s12 + $0x50] sm:$0xff] %v2601_v2   ;;  %v799_v6 = vadd.f32 %v2490_v24, %v798_v3 }
 0x1f3   :  { %v2041_v4 = vpop.f32.mrf.mxu0 }
 0x1f5   :  { %v801_v5 = vpop.f32.mrf.mxu0 }
 0x1f6   :  { %v802_v7 = vadd.f32 %v2490_v24, %v801_v5 }
 0x1f7   :  { %v2042_v10 = vpop.f32.mrf.mxu0 }
 0x1f8   :  { %v872_v11 = vpack.c.bf16 %v802_v7, %v799_v6 }
 0x1f9   :  { %v806_v13 = vpop.f32.mrf.mxu0 }
 0x1fa   :  { %1804 = vst [vmem:[%s2720_s12 + $0x58] sm:$0xff] %v872_v11   ;;  %v807_v18 = vadd.f32 %v2490_v24, %v806_v13 }
 0x1fb   :  { %v2045_v14 = vpop.f32.mrf.mxu0 }
 0x1fd   :  { %v809_v17 = vpop.f32.mrf.mxu0 }
 0x1fe   :  { %v810_v19 = vadd.f32 %v2490_v24, %v809_v17 }
 0x1ff   :  { %v2046_v20 = vpop.f32.mrf.mxu0 }
 0x200   :  { %v873_v21 = vpack.c.bf16 %v810_v19, %v807_v18 }
 0x201   :  { %v814_v22 = vpop.f32.mrf.mxu0 }
 0x202   :  { %1805 = vst [vmem:[%s2720_s12 + $0x60] sm:$0xff] %v873_v21   ;;  %v815_v39 = vadd.f32 %v2490_v24, %v814_v22 }
 0x203   :  { %v2049_v25 = vpop.f32.mrf.mxu0 }
 0x205   :  { %v817_v26 = vpop.f32.mrf.mxu0 }
 0x206   :  { %v818_v27 = vadd.f32 %v2490_v24, %v817_v26 }
 0x207   :  { %v2050_v28 = vpop.f32.mrf.mxu0 }
 0x208   :  { %v874_v30 = vpack.c.bf16 %v818_v27, %v815_v39 }
 0x209   :  { %v822_v32 = vpop.f32.mrf.mxu0 }
 0x20a   :  { %1806 = vst [vmem:[%s2720_s12 + $0x68] sm:$0xff] %v874_v30   ;;  %v823_v35 = vadd.f32 %v2490_v24, %v822_v32 }
 0x20b   :  { %v2053_v33 = vpop.f32.mrf.mxu0 }
 0x20c   :  { %v2150_v33 = vld [vmem:[%s2722_s8 + $0x10] sm:$0xff]  }
 0x20d   :  { %v825_v34 = vpop.f32.mrf.mxu0 }
 0x20e   :  { %v826_v37 = vadd.f32 %v2490_v24, %v825_v34 }
 0x20f   :  { %v2054_v38 = vpop.f32.mrf.mxu0 }
 0x210   :  { %v875_v41 = vpack.c.bf16 %v826_v37, %v823_v35  ;;  %v2151_v35 = vld [vmem:[%s2722_s8 + $0x8] sm:$0xff]   ;;  %v2152_v38 = vld [vmem:[%s2722_s8] sm:$0xff]  }
 0x211   :  { %v830_v42 = vpop.f32.mrf.mxu0 }
 0x212   :  { %1807 = vst [vmem:[%s2720_s12 + $0x70] sm:$0xff] %v875_v41   ;;  %v831_v46 = vadd.f32 %v2490_v24, %v830_v42 }
 0x213   :  { %v2057_v43 = vpop.f32.mrf.mxu0 }
 0x215   :  { %v833_v44 = vpop.f32.mrf.mxu0 }
 0x216   :  { %v834_v47 = vadd.f32 %v2490_v24, %v833_v44 }
 0x217   :  { %v2058_v49 = vpop.f32.mrf.mxu0 }
 0x218   :  { %v876_v50 = vpack.c.bf16 %v834_v47, %v831_v46 }
 0x219   :  { %v838_v51 = vpop.f32.mrf.mxu0 }
 0x21a   :  { %1808 = vst [vmem:[%s2720_s12 + $0x78] sm:$0xff] %v876_v50   ;;  %1858 = vmatprep.subr.bf16.mxu1 %v876_v50  ;;  %v839_v54 = vadd.f32 %v2490_v24, %v838_v51 }
 0x21b   :  { %v2061_v52 = vpop.f32.mrf.mxu0  ;;  %1859 = vmatpush3.bf16.msra.mxu1 %v2577_v40 }
 0x21c   :  { %1860 = vmatprep.subr.bf16.mxu1 %v875_v41 }
 0x21d   :  { %v841_v53 = vpop.f32.mrf.mxu0 }
 0x21e   :  { %v842_v56 = vadd.f32 %v2490_v24, %v841_v53 }
 0x21f   :  { %v2062_v57 = vpop.f32.mrf.mxu0  ;;  %1861 = vmatpush3.bf16.msra.mxu1 %v2569_v31 }
 0x220   :  { %v877_v58 = vpack.c.bf16 %v842_v56, %v839_v54  ;;  %1862 = vmatprep.subr.bf16.mxu1 %v874_v30  ;;  %v2153_v56 = vld [vmem:[%s2723_s10 + $0x8] sm:$0xff]   ;;  %v2154_v57 = vld [vmem:[%s2723_s10] sm:$0xff]  }
 0x221   :  { %v846_v59 = vpop.f32.mrf.mxu0 }
 0x222   :  { %1809 = vst [vmem:[%s2720_s12 + $0x80] sm:$0xff] %v877_v58   ;;  %v847_v62 = vadd.f32 %v2490_v24, %v846_v59 }
 0x223   :  { %v2065_v60 = vpop.f32.mrf.mxu0  ;;  %1863 = vmatpush3.bf16.msra.mxu1 %v2561_v23 }
 0x224   :  { %1864 = vmatprep.subr.bf16.mxu1 %v873_v21  ;;  %v1269_v60 = vld [vmem:[#allocation3] sm:$0xff] }
 0x225   :  { %v849_v40 = vpop.f32.mrf.mxu0 }
 0x226   :  { %v850_v3 = vadd.f32 %v2490_v24, %v849_v40  ;;  %v1272_v40 = vld [vmem:[#allocation3 + $0x18] sm:$0xff] }
 0x227   :  { %v2066_v4 = vpop.f32.mrf.mxu0  ;;  %1865 = vmatpush3.bf16.msra.mxu1 %v2549_v1 }
 0x228   :  { %v878_v31 = vpack.c.bf16 %v850_v3, %v847_v62  ;;  %1866 = vmatprep.subr.bf16.mxu1 %v872_v11  ;;  %v1271_v3 = vld [vmem:[#allocation3 + $0x10] sm:$0xff] }
 0x229   :  { %v854_v5 = vpop.f32.mrf.mxu0 }
 0x22a   :  { %1810 = vst [vmem:[%s2720_s12 + $0x88] sm:$0xff] %v878_v31   ;;  %v855_v7 = vadd.f32 %v2490_v24, %v854_v5 }
 0x22b   :  { %v2069_v6 = vpop.f32.mrf.mxu0  ;;  %1867 = vmatpush3.bf16.msra.mxu1 %v2521_v61  ;;  %v2148_v61 = vld [vmem:[%s2722_s8 + $0x20] sm:$0xff]  }
 0x22c   :  { %1868 = vmatprep.subr.bf16.mxu1 %v2601_v2  ;;  %v1270_v6 = vld [vmem:[#allocation3 + $0x8] sm:$0xff] }
 0x22d   :  { %v857_v23 = vpop.f32.mrf.mxu0 }
 0x22e   :  { %v858_v10 = vadd.f32 %v2490_v24, %v857_v23  ;;  %v2166_v24 = vmov 127  }
 0x22f   :  { %v2070_v13 = vpop.f32.mrf.mxu0  ;;  %1869 = vmatpush3.bf16.msra.mxu1 %v2510_v45  ;;  %2118 = vset.pattern.permute.xlu0 %v2166_v24  ;;  %v2147_v45 = vld [vmem:[%s2722_s8 + $0x28] sm:$0xff]  }
 0x230   :  { %v879_v1 = vpack.c.bf16 %v858_v10, %v855_v7  ;;  %1870 = vmatprep.subr.bf16.mxu1 %v2593_v55  ;;  %2119 = vset.pattern.permute.xlu1 %v2166_v24 }
 0x232   :  { %1811 = vst [vmem:[%s2720_s12 + $0x90] sm:$0xff] %v879_v1   ;;  %2071 = vmatprep.subr.bf16.mxu0 %v879_v1 }
 0x233   :  { %1871 = vmatpush3.bf16.msra.mxu1 %v2502_v36  ;;  %2072 = vmatpush3.bf16.msra.mxu0 %v879_v1  ;;  %v2146_v36 = vld [vmem:[%s2722_s8 + $0x30] sm:$0xff]  }
 0x234   :  { %1872 = vmatprep.subr.bf16.mxu1 %v2585_v48  ;;  %2073 = vmatprep.subr.bf16.mxu0 %v878_v31 }
 0x237   :  { %1873 = vmatpush3.bf16.msra.mxu1 %v2494_v29  ;;  %2074 = vmatpush3.bf16.msra.mxu0 %v878_v31  ;;  %v2145_v29 = vld [vmem:[%s2722_s8 + $0x38] sm:$0xff]  }
 0x238   :  { %2075 = vmatprep.subr.bf16.mxu0 %v877_v58  ;;  %2081 = vmatprep.subr.bf16.mxu1 %v2145_v29 }
 0x23a   :  { %1623 = vmatmul.mubr.msk.bf16.vlgmr.msra.gmra.mxu1 %vm2524_vm11, %v2165_v63 }
 0x23b   :  { %2076 = vmatpush3.bf16.msra.mxu0 %v877_v58  ;;  %1625 = vmatprep.mubr.msk.bf16.mxu1 %vm2545_vm4, %v2165_v63 }
 0x23c   :  { %2082 = vmatpush3.bf16.msra.mxu1 %v2145_v29  ;;  %2101 = vmatprep.subr.bf16.mxu0 %v2153_v56 }
 0x23d   :  { %2083 = vmatprep.subr.bf16.mxu1 %v2146_v36 }
 0x23e   :  { %2078 = vmatmul.mubr.msk.bf16.vlgmr.msra.gmra.mxu0 %vm1115_vm14, %v1110_v12 }
 0x23f   :  { %2102 = vmatpush3.bf16.msra.mxu0 %v2153_v56 }
 0x240   :  { %2084 = vmatpush3.bf16.msra.mxu1 %v2146_v36  ;;  %2103 = vmatprep.subr.bf16.mxu0 %v2154_v57 }
 0x241   :  { %2085 = vmatprep.subr.bf16.mxu1 %v2147_v45 }
 0x242   :  { %1627 = vmatmul.mubr.msk.bf16.gmra.mxu1 %vm2551_vm7, %v2165_v63  ;;  %v2149_v63 = vld [vmem:[%s2722_s8 + $0x18] sm:$0xff]  }
 0x243   :  { %2104 = vmatpush3.bf16.msra.mxu0 %v2154_v57 }
 0x244   :  { %2086 = vmatpush3.bf16.msra.mxu1 %v2147_v45 }
 0x245   :  { %2087 = vmatprep.subr.bf16.mxu1 %v2148_v61 }
 0x248   :  { %2088 = vmatpush3.bf16.msra.mxu1 %v2148_v61  ;;  %v1638_v61 = vld [vmem:[%s2724_s11] ss:$0 sm:$0xff] }
 0x249   :  { %2089 = vmatprep.subr.bf16.mxu1 %v2149_v63 }
 0x24c   :  { %2090 = vmatpush3.bf16.msra.mxu1 %v2149_v63 }
 0x24d   :  { %2091 = vmatprep.subr.bf16.mxu1 %v2150_v33 }
 0x250   :  { %2092 = vmatpush3.bf16.msra.mxu1 %v2150_v33 }
 0x251   :  { %2093 = vmatprep.subr.bf16.mxu1 %v2151_v35 }
 0x254   :  { %2094 = vmatpush3.bf16.msra.mxu1 %v2151_v35 }
 0x255   :  { %2095 = vmatprep.subr.bf16.mxu1 %v2152_v38 }
 0x258   :  { %2096 = vmatpush3.bf16.msra.mxu1 %v2152_v38 }
 0x2fa   :  { %v1874_v0 = vpop.f32.mrf.mxu1 }
 0x2fc   :  { %v1875_v8 = vpop.f32.mrf.mxu1 }
 0x2fd   :  { %v1876_v15 = vadd.f32 %v1875_v8, %v1874_v0 }
 0x2fe   :  { %v1877_v9 = vpop.f32.mrf.mxu1  ;;  %v2079_v12 = vpop.f32.mrf.mxu0 }
 0x300   :  { %v1878_v16 = vpop.f32.mrf.mxu1  ;;  %v1205_v48 = vpop.f32.mrf.mxu0 }
 0x301   :  { %v1206_v55 = vadd.f32 %v1876_v15, %v1205_v48  ;;  %v1879_v14 = vadd.f32 %v1878_v16, %v1877_v9 }
 0x302   :  { %v1880_v2 = vpop.f32.mrf.mxu1  ;;  %v2080_v11 = vpop.f32.mrf.mxu0 }
 0x303   :  { %v1235_v17 = vmax.f32 %v1206_v55, 1.0 }
 0x304   :  { %v1881_v18 = vpop.f32.mrf.mxu1  ;;  %v1208_v19 = vpop.f32.mrf.mxu0 }
 0x305   :  { %2155 = vrcp.f32 %v1235_v17  ;;  %v1882_v20 = vadd.f32 %v1881_v18, %v1880_v2  ;;  %v1209_v21 = vadd.f32 %v1879_v14, %v1208_v19 }
 0x306   :  { %v1883_v22 = vpop.f32.mrf.mxu1 }
 0x307   :  { %v1214_v25 = vadd.f32 %v2079_v12, %v1882_v20  ;;  %v1236_v26 = vmax.f32 %v1209_v21, 1.0 }
 0x308   :  { %v1884_v39 = vpop.f32.mrf.mxu1 }
 0x309   :  { %v1237_v27 = vmax.f32 %v1214_v25, 1.0  ;;  %2157 = vrcp.f32 %v1236_v26  ;;  %v1885_v28 = vadd.f32 %v1884_v39, %v1883_v22 }
 0x30b   :  { %2159 = vrcp.f32 %v1237_v27  ;;  %v1217_v30 = vadd.f32 %v2080_v11, %v1885_v28 }
 0x30d   :  { %v1238_v32 = vmax.f32 %v1217_v30, 1.0 }
 0x30f   :  { %2161 = vrcp.f32 %v1238_v32 }
 0x312   :  { %v2156_v34 = vpop.eup %2155 }
 0x313   :  { %1245 = vperm.xlu0 %2118, %v2156_v34  }
 0x316   :  { %v2158_v37 = vpop.eup %2157 }
 0x317   :  { %1250 = vperm.xlu0 %2118, %v2158_v37  }
 0x318   :  { %v2160_v41 = vpop.eup %2159 }
 0x319   :  { %1255 = vperm.xlu1 %2119, %v2160_v41  }
 0x31c   :  { %v2162_v42 = vpop.eup %2161 }
 0x31d   :  { %1260 = vperm.xlu1 %2119, %v2162_v42  }
 0x38e   :  { %v1246_v43 = vpop.permute.xlu0 %1245 }
 0x38f   :  { %v1263_v46 = vmul.f32 %v1246_v43, %v1206_v55 }
 0x392   :  { %v1251_v44 = vpop.permute.xlu0 %1250 }
 0x393   :  { %v1264_v47 = vmul.f32 %v1251_v44, %v1209_v21 }
 0x394   :  { %v1256_v49 = vpop.permute.xlu1 %1255 }
 0x395   :  { %v1267_v50 = vpack.c.bf16 %v1264_v47, %v1263_v46  ;;  %v1265_v52 = vmul.f32 %v1256_v49, %v1214_v25 }
 0x397   :  { %2097 = vmatprep.mubr.bf16.mxu1 %v1267_v50 }
 0x398   :  { %v1261_v51 = vpop.permute.xlu1 %1260 }
 0x399   :  { %v1266_v53 = vmul.f32 %v1261_v51, %v1217_v30 }
 0x39b   :  { %v1268_v54 = vpack.c.bf16 %v1266_v53, %v1265_v52 }
 0x39d   :  { %2098 = vmatmul.mubr.bf16.vlgmr.msra.gmra.mxu1 %v1268_v54 }
 0x45d   :  { %v2099_v58 = vpop.f32.mrf.mxu1 }
 0x45e   :  { %v1388_v5 = vadd.f32 %v2099_v58, %v1271_v3 }
 0x45f   :  { %v1371_v59 = vpop.f32.mrf.mxu1 }
 0x460   :  { %v1386_v4 = vadd.f32 %v1371_v59, %v1269_v60  ;;  %v1392_v24 = vmax.f32 %v1388_v5, 0.0 }
 0x461   :  { %v2100_v62 = vpop.f32.mrf.mxu1 }
 0x462   :  { %v1389_v31 = vadd.f32 %v2100_v62, %v1272_v40  ;;  %v1390_v13 = vmax.f32 %v1386_v4, 0.0 }
 0x463   :  { %v1374_v23 = vpop.f32.mrf.mxu1 }
 0x464   :  { %v1387_v7 = vadd.f32 %v1374_v23, %v1270_v6  ;;  %v1393_v10 = vmax.f32 %v1389_v31, 0.0 }
 0x466   :  { %v1391_v1 = vmax.f32 %v1387_v7, 0.0  ;;  %v1395_v36 = vpack.c.bf16 %v1393_v10, %v1392_v24 }
 0x468   :  { %v1394_v29 = vpack.c.bf16 %v1391_v1, %v1390_v13 }
 0x46a   :  { %2105 = vmatprep.mubr.msk.bf16.mxu0 %vm134_vm5, %v1394_v29 }
 0x46b   :  { %2106 = vmatmul.mubr.msk.bf16.vlgmr.msra.gmra.mxu0 %vm134_vm5, %v1395_v36 }
 0x52b   :  { %v2107_v45 = vpop.f32.mrf.mxu0 }
 0x52c   :  { %v1468_v8 = vadd.f32 %v2107_v45, %v1638_v61 }
 0x52d   :  { %v1459_v63 = vpop.f32.mrf.mxu0 }
 0x52e   :  { %v1460_v15 = vadd.f32 %v1638_v61, %v1459_v63 }
 0x52f   :  { %v2108_v0 = vpop.f32.mrf.mxu0 }
 0x530   :  { %v1471_v9 = vadd.f32 %v2108_v0, %v1638_v61 }
 0x531   :  { %v1462_v12 = vpop.f32.mrf.mxu0 }
 0x532   :  { %v1792_v16 = vpack.c.bf16 %v1471_v9, %v1468_v8  ;;  %v1463_v48 = vadd.f32 %v1638_v61, %v1462_v12 }
 0x534   :  { %1812 = vst [vmem:[%s2725_s13 + $0x8] sm:$0xff] %v1792_v16   ;;  %v1787_v55 = vpack.c.bf16 %v1463_v48, %v1460_v15 }
 0x536   :  { %1788 = vst [vmem:[%s2725_s13] sm:$0xff] %v1787_v55  }

</bundles_post_ra>
